<compile_context>
chip_gen: v5e
topology: v5e:2x2
jax: 0.10.0
libtpu: 0.0.40
codegen_flags: <defaults>
</compile_context>

<pallas_src>
import functools
import math

import jax
import jax.numpy as jnp
import numpy as np
from jax.experimental import pallas as pl
from jax.experimental.pallas import tpu as pltpu

NEG_SLOPE = 0.01      # torch F.leaky_relu default negative_slope
NEG_BIG = -1e30       # finite "-inf" init for the running max


def _round_up(x, m):
    return ((x + m - 1) // m) * m


def _gat_attn_kernel(z_src_ref, e_src_ref, e_dst_ref, adj_ref,
                     out_ref, m_sc, l_sc, acc_sc, *, ones_col):
    """Online-softmax attention aggregation for one (dst tile, src tile) pair.

    z_src_ref : [tile_src, d_pad]  bf16 projected source features; if
                ones_col is not None, column `ones_col` holds 1.0 so the row
                sum of p (softmax denominator) comes out of the matmul.
    e_src_ref : [1, tile_src]      a_src . z_j   (f32, lane-major row)
    e_dst_ref : [tile_dst, 1]      a_dst . z_i   (f32 column)
    adj_ref   : [tile_dst, tile_src]  bf16 0/1 adjacency (edge j -> i)
    """
    j = pl.program_id(1)

    @pl.when(j == 0)
    def _init():
        m_sc[...] = jnp.full_like(m_sc, NEG_BIG)
        l_sc[...] = jnp.zeros_like(l_sc)
        acc_sc[...] = jnp.zeros_like(acc_sc)

    # attn_fc(concat([z_src, z_dst])) == a_src.z_src + a_dst.z_dst
    e = e_dst_ref[...] + e_src_ref[...]                     # [td, ts] VPU bcast add
    e = jnp.maximum(e, NEG_SLOPE * e)                       # leaky_relu (1 max)

    m_prev = m_sc[...]
    # Unmasked running max is still a valid stability bound; masking is applied
    # multiplicatively after the exp (non-edges and padding have adj == 0).
    m_new = jnp.maximum(m_prev, jnp.max(e, axis=-1, keepdims=True))
    scale = jnp.exp(m_prev - m_new)
    p = jnp.exp(e - m_new) * adj_ref[...].astype(jnp.float32)   # [td, ts]

    if ones_col is None:
        # No free padded lane: keep the explicit row-sum for the denominator.
        l_sc[...] = scale * l_sc[...] + jnp.sum(p, axis=-1, keepdims=True)

    acc_sc[...] = scale * acc_sc[...] + jnp.dot(
        p.astype(jnp.bfloat16), z_src_ref[...],
        preferred_element_type=jnp.float32)                  # bf16 MXU, f32 acc
    m_sc[...] = m_new

    @pl.when(j == pl.num_programs(1) - 1)
    def _finalize():
        acc = acc_sc[...]
        if ones_col is None:
            denom = l_sc[...]
        else:
            # Pull the denominator out of the ones column of the accumulator.
            lane = jax.lax.broadcasted_iota(jnp.int32, acc.shape, 1)
            denom = jnp.sum(jnp.where(lane == ones_col, acc, 0.0),
                            axis=-1, keepdims=True)
        denom = jnp.maximum(denom, 1e-30)                    # zero-degree safety
        inv = pl.reciprocal(denom, approx=True)              # EUP
        inv = inv * (2.0 - denom * inv)                      # one Newton step
        out_ref[...] = (acc * inv).astype(out_ref.dtype)


def gat_layer(h, adj, w_fc, w_attn, *, n_dst, use_residual=False,
              tile_dst=512, tile_src=1024):
    """Pallas GAT layer forward.

    h      : [N_src, in_dim] float
    adj    : [N_dst, N_src]  0/1 (adj[i, j] = 1 iff edge j -> i); any nonzero
             entry is treated as an edge (binarized in the wrapper).
    w_fc   : [out_dim, in_dim]   (torch nn.Linear weight layout)
    w_attn : [1, 2*out_dim]      (torch nn.Linear weight layout)
    """
    n_src, in_dim = h.shape
    out_dim = w_fc.shape[0]

    # ---- hoisted projections (plain XLA matmuls, done once, not per tile) ----
    h = jnp.asarray(h, jnp.float32)
    w_t = jnp.asarray(w_fc, jnp.float32).T                    # [in_dim, out_dim]
    a_src = jnp.asarray(w_attn[0, :out_dim], jnp.float32)
    a_dst = jnp.asarray(w_attn[0, out_dim:], jnp.float32)

    z = h @ w_t                                               # [N_src, out_dim] f32
    e_src = (z @ a_src).reshape(1, n_src)                     # [1, N_src] lane-major
    e_dst = (z[:n_dst] @ a_dst).reshape(n_dst, 1)             # [N_dst, 1]

    # ---- padding / tiling (lane-dense output, (sublane,128)-aligned tiles) ----
    d_pad = _round_up(out_dim, 128)
    # Free padded lane -> carry the softmax denominator through the MXU.
    ones_col = out_dim if out_dim < d_pad else None

    SUB = 16                                                  # bf16 sublane pack
    tile_dst = max(SUB, min(tile_dst, _round_up(n_dst, SUB)))
    tile_dst = _round_up(tile_dst, SUB)
    # Keep >= 4 dst tiles on large graphs so v7x's 2 TensorCores both get work,
    # without shrinking tiles below 128 rows.
    if n_dst >= 4 * 128:
        tile_dst = min(tile_dst, _round_up(math.ceil(n_dst / 4), SUB))
    tile_src = max(128, min(tile_src, _round_up(n_src, 128)))
    tile_src = _round_up(tile_src, 128)

    n_dst_pad = _round_up(n_dst, tile_dst)
    n_src_pad = _round_up(n_src, tile_src)

    # z in bf16 (halves HBM/VMEM, single-pass MXU), with a ones column in a
    # padded lane when available.
    z_bf = z.astype(jnp.bfloat16)
    cols = [z_bf]
    extra = d_pad - out_dim
    if ones_col is not None:
        cols.append(jnp.ones((n_src, 1), jnp.bfloat16))
        extra -= 1
    if extra > 0:
        cols.append(jnp.zeros((n_src, extra), jnp.bfloat16))
    z_pad = jnp.concatenate(cols, axis=1) if len(cols) > 1 else z_bf
    z_pad = jnp.pad(z_pad, ((0, n_src_pad - n_src), (0, 0)))

    e_src_pad = jnp.pad(e_src, ((0, 0), (0, n_src_pad - n_src)))
    e_dst_pad = jnp.pad(e_dst, ((0, n_dst_pad - n_dst), (0, 0)))
    adj_bin = (jnp.asarray(adj) > 0).astype(jnp.bfloat16)     # binarize edges
    adj_pad = jnp.pad(adj_bin,
                      ((0, n_dst_pad - n_dst), (0, n_src_pad - n_src)))

    grid = (n_dst_pad // tile_dst, n_src_pad // tile_src)

    kernel = functools.partial(_gat_attn_kernel, ones_col=ones_col)

    out_pad = pl.pallas_call(
        kernel,
        out_shape=jax.ShapeDtypeStruct((n_dst_pad, d_pad), jnp.float32),
        grid_spec=pltpu.PrefetchScalarGridSpec(
            num_scalar_prefetch=0,
            grid=grid,
            in_specs=[
                pl.BlockSpec((tile_src, d_pad), lambda i, j: (j, 0)),     # z (bf16)
                pl.BlockSpec((1, tile_src), lambda i, j: (0, j)),         # e_src row
                pl.BlockSpec((tile_dst, 1), lambda i, j: (i, 0)),         # e_dst col
                pl.BlockSpec((tile_dst, tile_src), lambda i, j: (i, j)),  # adj (bf16)
            ],
            out_specs=pl.BlockSpec((tile_dst, d_pad), lambda i, j: (i, 0)),
            scratch_shapes=[
                pltpu.VMEM((tile_dst, 1), jnp.float32),       # running max m
                pltpu.VMEM((tile_dst, 1), jnp.float32),       # running sum l (fallback)
                pltpu.VMEM((tile_dst, d_pad), jnp.float32),   # accumulator
            ],
        ),
        compiler_params=pltpu.CompilerParams(
            dimension_semantics=("parallel", "arbitrary"),
        ),
    )(z_pad, e_src_pad, e_dst_pad, adj_pad)

    out = out_pad[:n_dst, :out_dim]
    if use_residual:
        out = out + z[:n_dst]                                 # residual in f32, XLA-side
    return out


def gat_layer_ref(h, adj, w_fc, w_attn, *, n_dst, use_residual=False):
    """Pure-JAX f32 reference (mirrors the DGL semantics densely)."""
    out_dim = w_fc.shape[0]
    z = jnp.asarray(h, jnp.float32) @ jnp.asarray(w_fc, jnp.float32).T
    z_dst = z[:n_dst]
    a_src = jnp.asarray(w_attn[0, :out_dim], jnp.float32)
    a_dst = jnp.asarray(w_attn[0, out_dim:], jnp.float32)
    e = (z_dst @ a_dst)[:, None] + (z @ a_src)[None, :]
    e = jnp.where(e > 0, e, NEG_SLOPE * e)
    mask = adj > 0
    e = jnp.where(mask, e, -jnp.inf)
    m = jnp.max(e, axis=-1, keepdims=True)
    p = jnp.where(mask, jnp.exp(e - m), 0.0)
    alpha = p / jnp.sum(p, axis=-1, keepdims=True)
    h_out = alpha @ z
    return z_dst + h_out if use_residual else h_out


def _make_graph(key, n_src, n_dst, in_dim, out_dim, p_edge=0.3):
    k_h, k_adj, k_fc, k_attn = jax.random.split(key, 4)
    gain = math.sqrt(2.0)  # nn.init.calculate_gain('relu')
    std_fc = gain * math.sqrt(2.0 / (in_dim + out_dim))
    w_fc = std_fc * jax.random.normal(k_fc, (out_dim, in_dim), jnp.float32)
    std_attn = gain * math.sqrt(2.0 / (2 * out_dim + 1))
    w_attn = std_attn * jax.random.normal(k_attn, (1, 2 * out_dim), jnp.float32)
    h = jax.random.normal(k_h, (n_src, in_dim), jnp.float32)
    adj = (jax.random.uniform(k_adj, (n_dst, n_src)) < p_edge).astype(jnp.float32)
    adj = jnp.maximum(adj, jnp.eye(n_dst, n_src, dtype=jnp.float32))  # self-loops
    return h, adj, w_fc, w_attn


if __name__ == "__main__":
    key = jax.random.PRNGKey(0)
    k1, k2 = jax.random.split(key)

    # bf16 z / bf16 p@z on the MXU -> compare against the f32 reference with
    # bf16-appropriate tolerances.
    RTOL, ATOL = 2e-2, 2e-2

    # --- small case (matches the module's toy scale), residual off and on ---
    in_dim, out_dim, n_src, n_dst = 32, 16, 16, 16
    h, adj, w_fc, w_attn = _make_graph(k1, n_src, n_dst, in_dim, out_dim)

    out = jax.block_until_ready(
        gat_layer(h, adj, w_fc, w_attn, n_dst=n_dst, use_residual=False))
    ref = gat_layer_ref(h, adj, w_fc, w_attn, n_dst=n_dst, use_residual=False)
    np.testing.assert_allclose(np.asarray(out), np.asarray(ref),
                               rtol=RTOL, atol=ATOL)

    out_res = jax.block_until_ready(
        gat_layer(h, adj, w_fc, w_attn, n_dst=n_dst, use_residual=True))
    ref_res = gat_layer_ref(h, adj, w_fc, w_attn, n_dst=n_dst, use_residual=True)
    np.testing.assert_allclose(np.asarray(out_res), np.asarray(ref_res),
                               rtol=RTOL, atol=ATOL)

    # --- ragged case exercising padding + multi-tile online softmax ---
    in_dim2, out_dim2, n_src2, n_dst2 = 40, 24, 300, 100
    h2, adj2, w_fc2, w_attn2 = _make_graph(k2, n_src2, n_dst2, in_dim2, out_dim2)

    out2 = jax.block_until_ready(
        gat_layer(h2, adj2, w_fc2, w_attn2, n_dst=n_dst2, use_residual=True,
                  tile_dst=64, tile_src=128))
    ref2 = gat_layer_ref(h2, adj2, w_fc2, w_attn2, n_dst=n_dst2,
                         use_residual=True)
    np.testing.assert_allclose(np.asarray(out2), np.asarray(ref2),
                               rtol=RTOL, atol=ATOL)

    print("KERNEL_OK")
</pallas_src>

<mosaic_0001>
module attributes {stable_mosaic.version = 11 : i64} {
  func.func @_gat_attn_kernel(%arg0: i32, %arg1: i32, %arg2: memref<128x128xbf16, #tpu.memory_space<vmem>>, %arg3: memref<1x128xf32, #tpu.memory_space<vmem>>, %arg4: memref<16x1xf32, #tpu.memory_space<vmem>>, %arg5: memref<16x128xbf16, #tpu.memory_space<vmem>>, %arg6: memref<16x128xf32, #tpu.memory_space<vmem>>, %arg7: memref<16x1xf32, #tpu.memory_space<vmem>>, %arg8: memref<16x1xf32, #tpu.memory_space<vmem>>, %arg9: memref<16x128xf32, #tpu.memory_space<vmem>>) attributes {dimension_semantics = [#tpu.dimension_semantics<parallel>, #tpu.dimension_semantics<arbitrary>], iteration_bounds = array<i64: 1, 1>, scalar_prefetch = 0 : i64, scratch_operands = 3 : i64, tpu.core_type = #tpu.core_type<tc>, window_params = [{transform_indices = @transform_0, window_bounds = array<i64: 128, 128>}, {transform_indices = @transform_1, window_bounds = array<i64: 1, 128>}, {transform_indices = @transform_2, window_bounds = array<i64: 16, 1>}, {transform_indices = @transform_3, window_bounds = array<i64: 16, 128>}, {transform_indices = @transform_4, window_bounds = array<i64: 16, 128>}]} {
    %c0_i32 = arith.constant 0 : i32
    %0 = arith.cmpi eq, %arg1, %c0_i32 : i32
    %1 = arith.extui %0 : i1 to i32
    %c0_i32_0 = arith.constant 0 : i32
    %2 = arith.cmpi ne, %1, %c0_i32_0 : i32
    scf.if %2 {
      %cst_20 = arith.constant -1.000000e+30 : f32
      %35 = vector.broadcast %cst_20 : f32 to vector<16x1xf32>
      %c0_21 = arith.constant 0 : index
      %c0_22 = arith.constant 0 : index
      %36 = vector.load %arg7[%c0_21, %c0_22] : memref<16x1xf32, #tpu.memory_space<vmem>>, vector<16x1xf32>
      tpu.vector_store %arg7[%c0_21, %c0_22], %35 {strides = array<i32>} : memref<16x1xf32, #tpu.memory_space<vmem>>, vector<16x1xf32>,
      %cst_23 = arith.constant 0.000000e+00 : f32
      %37 = vector.broadcast %cst_23 : f32 to vector<16x1xf32>
      %c0_24 = arith.constant 0 : index
      %c0_25 = arith.constant 0 : index
      %38 = vector.load %arg8[%c0_24, %c0_25] : memref<16x1xf32, #tpu.memory_space<vmem>>, vector<16x1xf32>
      tpu.vector_store %arg8[%c0_24, %c0_25], %37 {strides = array<i32>} : memref<16x1xf32, #tpu.memory_space<vmem>>, vector<16x1xf32>,
      %cst_26 = arith.constant 0.000000e+00 : f32
      %39 = vector.broadcast %cst_26 : f32 to vector<16x128xf32>
      %c0_27 = arith.constant 0 : index
      %c0_28 = arith.constant 0 : index
      %40 = vector.load %arg9[%c0_27, %c0_28] : memref<16x128xf32, #tpu.memory_space<vmem>>, vector<16x128xf32>
      tpu.vector_store %arg9[%c0_27, %c0_28], %39 {strides = array<i32>} : memref<16x128xf32, #tpu.memory_space<vmem>>, vector<16x128xf32>,
    } else {
    }
    %c0 = arith.constant 0 : index
    %c0_1 = arith.constant 0 : index
    %3 = vector.load %arg4[%c0, %c0_1] : memref<16x1xf32, #tpu.memory_space<vmem>>, vector<16x1xf32>
    %c0_2 = arith.constant 0 : index
    %c0_3 = arith.constant 0 : index
    %4 = vector.load %arg3[%c0_2, %c0_3] : memref<1x128xf32, #tpu.memory_space<vmem>>, vector<1x128xf32>
    %5 = vector.broadcast %3 : vector<16x1xf32> to vector<16x128xf32>
    %6 = vector.broadcast %4 : vector<1x128xf32> to vector<16x128xf32>
    %7 = arith.addf %5, %6 : vector<16x128xf32>
    %cst = arith.constant 0.00999999977 : f32
    %8 = vector.broadcast %cst : f32 to vector<16x128xf32>
    %9 = arith.mulf %8, %7 : vector<16x128xf32>
    %10 = arith.maximumf %7, %9 : vector<16x128xf32>
    %c0_4 = arith.constant 0 : index
    %c0_5 = arith.constant 0 : index
    %11 = vector.load %arg7[%c0_4, %c0_5] : memref<16x1xf32, #tpu.memory_space<vmem>>, vector<16x1xf32>
    %cst_6 = arith.constant dense<0xFF800000> : vector<16xf32>
    %12 = vector.multi_reduction <maximumf>, %10, %cst_6 [1] : vector<16x128xf32> to vector<16xf32>
    %13 = vector.shape_cast %12 : vector<16xf32> to vector<16x1xf32>
    %14 = arith.maximumf %11, %13 : vector<16x1xf32>
    %15 = arith.subf %11, %14 : vector<16x1xf32>
    %16 = math.exp %15 : vector<16x1xf32>
    %17 = vector.broadcast %14 : vector<16x1xf32> to vector<16x128xf32>
    %18 = arith.subf %10, %17 : vector<16x128xf32>
    %19 = math.exp %18 : vector<16x128xf32>
    %c0_7 = arith.constant 0 : index
    %c0_8 = arith.constant 0 : index
    %20 = vector.load %arg5[%c0_7, %c0_8] : memref<16x128xbf16, #tpu.memory_space<vmem>>, vector<16x128xbf16>
    %21 = arith.extf %20 : vector<16x128xbf16> to vector<16x128xf32>
    %22 = arith.mulf %19, %21 : vector<16x128xf32>
    %c0_9 = arith.constant 0 : index
    %c0_10 = arith.constant 0 : index
    %23 = vector.load %arg9[%c0_9, %c0_10] : memref<16x128xf32, #tpu.memory_space<vmem>>, vector<16x128xf32>
    %24 = vector.broadcast %16 : vector<16x1xf32> to vector<16x128xf32>
    %25 = arith.mulf %24, %23 : vector<16x128xf32>
    %26 = arith.truncf %22 : vector<16x128xf32> to vector<16x128xbf16>
    %c0_11 = arith.constant 0 : index
    %c0_12 = arith.constant 0 : index
    %27 = vector.load %arg2[%c0_11, %c0_12] : memref<128x128xbf16, #tpu.memory_space<vmem>>, vector<128x128xbf16>
    %cst_13 = arith.constant dense<0.000000e+00> : vector<16x128xf32>
    %28 = tpu.matmul %26, %27, %cst_13 {dimension_numbers = #tpu.dot_dimension_numbers<[1], [0], [0], [1], [0, 0, 1, 1], [], []>} : vector<16x128xbf16>, vector<128x128xbf16>, vector<16x128xf32> -> vector<16x128xf32>
    %29 = arith.addf %25, %28 : vector<16x128xf32>
    %c0_14 = arith.constant 0 : index
    %c0_15 = arith.constant 0 : index
    %30 = vector.load %arg9[%c0_14, %c0_15] : memref<16x128xf32, #tpu.memory_space<vmem>>, vector<16x128xf32>
    tpu.vector_store %arg9[%c0_14, %c0_15], %29 {strides = array<i32>} : memref<16x128xf32, #tpu.memory_space<vmem>>, vector<16x128xf32>,
    %c0_16 = arith.constant 0 : index
    %c0_17 = arith.constant 0 : index
    %31 = vector.load %arg7[%c0_16, %c0_17] : memref<16x1xf32, #tpu.memory_space<vmem>>, vector<16x1xf32>
    tpu.vector_store %arg7[%c0_16, %c0_17], %14 {strides = array<i32>} : memref<16x1xf32, #tpu.memory_space<vmem>>, vector<16x1xf32>,
    %c0_i32_18 = arith.constant 0 : i32
    %32 = arith.cmpi eq, %arg1, %c0_i32_18 : i32
    %33 = arith.extui %32 : i1 to i32
    %c0_i32_19 = arith.constant 0 : i32
    %34 = arith.cmpi ne, %33, %c0_i32_19 : i32
    scf.if %34 {
      %c0_20 = arith.constant 0 : index
      %c0_21 = arith.constant 0 : index
      %35 = vector.load %arg9[%c0_20, %c0_21] : memref<16x128xf32, #tpu.memory_space<vmem>>, vector<16x128xf32>
      %36 = tpu.iota {dimensions = array<i32: 1>} : vector<16x128xi32>
      %c16_i32 = arith.constant 16 : i32
      %37 = vector.broadcast %c16_i32 : i32 to vector<16x128xi32>
      %38 = arith.cmpi eq, %36, %37 : vector<16x128xi32>
      %cst_22 = arith.constant 0.000000e+00 : f32
      %39 = vector.broadcast %cst_22 : f32 to vector<16x128xf32>
      %40 = arith.select %38, %35, %39 : vector<16x128xi1>, vector<16x128xf32>
      %cst_23 = arith.constant dense<0.000000e+00> : vector<16xf32>
      %41 = vector.multi_reduction <add>, %40, %cst_23 [1] : vector<16x128xf32> to vector<16xf32>
      %42 = vector.shape_cast %41 : vector<16xf32> to vector<16x1xf32>
      %cst_24 = arith.constant 1.000000e-30 : f32
      %43 = vector.broadcast %cst_24 : f32 to vector<16x1xf32>
      %44 = arith.maximumf %42, %43 : vector<16x1xf32>
      %45 = tpu.reciprocal %44 {approx = true} : vector<16x1xf32> -> vector<16x1xf32>
      %46 = arith.mulf %44, %45 : vector<16x1xf32>
      %cst_25 = arith.constant 2.000000e+00 : f32
      %47 = vector.broadcast %cst_25 : f32 to vector<16x1xf32>
      %48 = arith.subf %47, %46 : vector<16x1xf32>
      %49 = arith.mulf %45, %48 : vector<16x1xf32>
      %50 = vector.broadcast %49 : vector<16x1xf32> to vector<16x128xf32>
      %51 = arith.mulf %35, %50 : vector<16x128xf32>
      %c0_26 = arith.constant 0 : index
      %c0_27 = arith.constant 0 : index
      %52 = vector.load %arg6[%c0_26, %c0_27] : memref<16x128xf32, #tpu.memory_space<vmem>>, vector<16x128xf32>
      tpu.vector_store %arg6[%c0_26, %c0_27], %51 {strides = array<i32>} : memref<16x128xf32, #tpu.memory_space<vmem>>, vector<16x128xf32>,
    } else {
    }
    return
  }
  func.func @transform_0(%arg0: i32, %arg1: i32) -> (i32, i32) {
    %c0_i32 = arith.constant 0 : i32
    %c0_i32_0 = arith.constant 0 : i32
    return %arg1, %c0_i32 : i32, i32
  }
  func.func @transform_1(%arg0: i32, %arg1: i32) -> (i32, i32) {
    %c0_i32 = arith.constant 0 : i32
    %c0_i32_0 = arith.constant 0 : i32
    return %c0_i32, %arg1 : i32, i32
  }
  func.func @transform_2(%arg0: i32, %arg1: i32) -> (i32, i32) {
    %c0_i32 = arith.constant 0 : i32
    %c0_i32_0 = arith.constant 0 : i32
    return %arg0, %c0_i32 : i32, i32
  }
  func.func @transform_3(%arg0: i32, %arg1: i32) -> (i32, i32) {
    %c0_i32 = arith.constant 0 : i32
    return %arg0, %arg1 : i32, i32
  }
  func.func @transform_4(%arg0: i32, %arg1: i32) -> (i32, i32) {
    %c0_i32 = arith.constant 0 : i32
    %c0_i32_0 = arith.constant 0 : i32
    return %arg0, %c0_i32 : i32, i32
  }
}

</mosaic_0001>

<bundles_post_ra>
// kernel: tpu_custom_call.1
= control target key start
LH: loop header
LB: loop body
LE: loop exit
PB: predicated region body
PF: predicated region fallthrough
CT: control target
= control target key end

     0   :  { %9 = vsyncpa [#allocation6], 0  ;;  %s426_s0 = inlined_call_operand.hbm [shape: bf16[128,128], index: 0, kind: input, shape index: {}]   ;;  %s427_s1 = inlined_call_operand.vmem [shape: f32[1,128], index: 1, kind: input, shape index: {}]   ;;  %s428_s2 = inlined_call_operand.vmem [shape: f32[16,1], index: 2, kind: input, shape index: {}]   ;;  %s429_s3 = inlined_call_operand.vmem [shape: bf16[16,128], index: 3, kind: input, shape index: {}]   ;;  %s430_s4 = inlined_call_operand.hbm [shape: f32[16,128], index: 4, kind: output, shape index: {}]  }
   0x1   :  { %10 = vsyncpa [#allocation7], 0  ;;  %s15_s17 = sshll.u32 %s426_s0, 4  ;;  %s371_s18 = smov [#allocation5]   ;;  %s16_s17 = int_to_ptr.hbm [resolvable:$true] %s15_s17 }
   0x2   :  { %s17_s19 = sshll.u32 %s371_s18, 4  ;;  %s372_s20 = smov 64   ;;  %s18_s19 = int_to_ptr.vmem [resolvable:$true] %s17_s19 }
   0x3   :  { %s373_s21 = smov 4  }
   0x4   :  { %23 = dma.hbm_to_vmem [thread:$0]  %s16_s17, 1024, %s18_s19, [#allocation6], %s372_s20, %s372_s20, %s373_s21  }
   0x5   :  { %367 = dma.done.wait [#allocation6], 1024  }
   0x6   :  { %368 = vsyncadd [#allocation6], 4294966272  ;;  %v374_v0 = vmov 0   ;;  %v45_v1 = vld [vmem:[%s428_s2] sm:$0xff]  ;;  %v46_v2 = vld [vmem:[%s428_s2 + $0x8] sm:$0xff]  ;;  %vm38_vm0 = vcmask 7168   ;;  %v208_v47 = vlaneseq }
   0x7   :  { %303 = vset.pattern.permute.xlu0 %v374_v0  ;;  %304 = vset.pattern.permute.xlu2 %v374_v0  ;;  %v375_v3 = vmov -1e+30   ;;  %v306_v4 = vld [vmem:[%s427_s1] ss:$0 sm:$0xff]  ;;  %v289_v13 = vld [vmem:[#allocation5 + $0x38] sm:$0xff]  ;;  %v287_v27 = vld [vmem:[#allocation5 + $0x28] sm:$0xff] }
   0x8   :  { %305 = vset.pattern.permute.xlu1 %v374_v0  ;;  %50 = vperm.xlu0 %303, %v45_v1   ;;  %39 = vst.msk [vmem:[#allocation2] sm:$0xff] %vm38_vm0, %v375_v3  ;;  %v288_v14 = vld [vmem:[#allocation5 + $0x30] sm:$0xff]  ;;  %v286_v28 = vld [vmem:[#allocation5 + $0x20] sm:$0xff]  ;;  %v285_v29 = vld [vmem:[#allocation5 + $0x18] sm:$0xff]  ;;  %v209_v49 = vand.u32 127, %v208_v47  ;;  %s237_s30 = sshll.u32 %s430_s4, 4  ;;  %s238_s30 = int_to_ptr.hbm [resolvable:$true] %s237_s30 }
   0x9   :  { %40 = vst.msk [vmem:[#allocation2 + $0x8] sm:$0xff] %vm38_vm0, %v375_v3  ;;  %182 = vmatpush.bf16.msra.mxu0 %v289_v13  ;;  %v284_v30 = vld [vmem:[#allocation5 + $0x10] sm:$0xff]  ;;  %v283_v31 = vld [vmem:[#allocation5 + $0x8] sm:$0xff]  ;;  %v282_v32 = vld [vmem:[#allocation5] sm:$0xff]  ;;  %s377_s5 = smov 128   ;;  %s378_s6 = smov 8  }
   0xa   :  { %v291_v39 = vld [vmem:[%s429_s3] sm:$0xff]   ;;  %vm210_vm1 = vcmp.eq.s32.totalorder %v209_v49, 16  ;;  %s376_s3 = smov [#allocation8]  }
   0xb   :  { %v292_v40 = vunpack.c.l.bf16 %v291_v39  ;;  %v293_v41 = vunpack.c.h.bf16 %v291_v39  ;;  %s235_s27 = sshll.u32 %s376_s3, 4  ;;  %s236_s27 = int_to_ptr.vmem [resolvable:$true] %s235_s27 }
   0xd   :  { %183 = vmatpush.bf16.msra.mxu0 %v288_v14 }
   0xf   :  { %v67_v15 = vld [vmem:[#allocation2] sm:$0xff] }
  0x10   :  { %55 = vperm.xlu0 %303, %v46_v2   ;;  %v68_v20 = vld [vmem:[#allocation2 + $0x8] sm:$0xff] }
  0x11   :  { %184 = vmatpush.bf16.msra.mxu0 %v287_v27 }
  0x15   :  { %185 = vmatpush.bf16.msra.mxu0 %v286_v28 }
  0x19   :  { %186 = vmatpush.bf16.msra.mxu0 %v285_v29 }
  0x1d   :  { %187 = vmatpush.bf16.msra.mxu0 %v284_v30 }
  0x21   :  { %188 = vmatpush.bf16.msra.mxu0 %v283_v31 }
  0x25   :  { %189 = vmatpush.bf16.msra.mxu0 %v282_v32 }
  0x7a   :  { %v51_v5 = vpop.permute.xlu0 %50 }
  0x7b   :  { %v61_v6 = vadd.f32 %v306_v4, %v51_v5 }
  0x7d   :  { %v63_v7 = vmul.f32 0.01, %v61_v6 }
  0x7f   :  { %v65_v8 = vmax.f32 %v61_v6, %v63_v7 }
  0x81   :  { %69 = vmax.xlane.f32.xlu1 %v65_v8 }
  0x82   :  { %v56_v9 = vpop.permute.xlu0 %55 }
  0x83   :  { %v62_v10 = vadd.f32 %v306_v4, %v56_v9 }
  0x85   :  { %v64_v11 = vmul.f32 0.01, %v62_v10 }
  0x87   :  { %v66_v12 = vmax.f32 %v62_v10, %v64_v11 }
  0x89   :  { %71 = vmax.xlane.f32.xlu1 %v66_v12 }
  0xf4   :  { %v70_v16 = vpop.xlane.xlu1 %69 }
  0xf5   :  { %v73_v17 = vmax.f32 %v67_v15, %v70_v16 }
  0xf7   :  { %v75_v18 = vsub.f32 %v67_v15, %v73_v17  ;;  %201 = vst.msk [vmem:[#allocation2] sm:$0xff] %vm38_vm0, %v73_v17  ;;  %83 = vperm.xlu2 %304, %v73_v17  }
  0xf9   :  { %v77_v19 = vmul.f32 1.442695, %v75_v18 }
  0xfb   :  { %307 = vpow2.f32 %v77_v19 }
  0xfc   :  { %v72_v21 = vpop.xlane.xlu1 %71 }
  0xfd   :  { %v74_v22 = vmax.f32 %v68_v20, %v72_v21 }
  0xff   :  { %v76_v23 = vsub.f32 %v68_v20, %v74_v22  ;;  %202 = vst.msk [vmem:[#allocation2 + $0x8] sm:$0xff] %vm38_vm0, %v74_v22  ;;  %88 = vperm.xlu2 %304, %v74_v22  }
 0x101   :  { %v308_v24 = vpop.eup %307  ;;  %v79_v25 = vmul.f32 1.442695, %v76_v23 }
 0x102   :  { %107 = vperm.xlu0 %303, %v308_v24  }
 0x103   :  { %309 = vpow2.f32 %v79_v25 }
 0x109   :  { %v310_v26 = vpop.eup %309 }
 0x10a   :  { %112 = vperm.xlu1 %305, %v310_v26  }
 0x151   :  { %v84_v33 = vpop.permute.xlu2 %83 }
 0x152   :  { %v91_v34 = vsub.f32 %v65_v8, %v84_v33 }
 0x154   :  { %v93_v35 = vmul.f32 1.442695, %v91_v34 }
 0x156   :  { %311 = vpow2.f32 %v93_v35 }
 0x159   :  { %v89_v36 = vpop.permute.xlu2 %88 }
 0x15a   :  { %v92_v37 = vsub.f32 %v66_v12, %v89_v36 }
 0x15c   :  { %v95_v38 = vmul.f32 1.442695, %v92_v37  ;;  %v312_v42 = vpop.eup %311 }
 0x15d   :  { %v101_v44 = vmul.f32 %v312_v42, %v292_v40 }
 0x15e   :  { %313 = vpow2.f32 %v95_v38 }
 0x164   :  { %v314_v43 = vpop.eup %313 }
 0x165   :  { %v102_v45 = vmul.f32 %v314_v43, %v293_v41 }
 0x167   :  { %v117_v46 = vpack.c.bf16 %v102_v45, %v101_v44 }
 0x169   :  { %190 = vmatmul.bf16.vlgmr.msra.gmra.mxu0 %v117_v46 }
 0x174   :  { %v108_v48 = vpop.permute.xlu0 %107 }
 0x175   :  { %v115_v50 = vmul.f32 0.0, %v108_v48 }
 0x17c   :  { %v113_v54 = vpop.permute.xlu1 %112 }
 0x17d   :  { %v116_v55 = vmul.f32 0.0, %v113_v54 }
 0x1e6   :  { %v191_v51 = vpop.f32.mrf.mxu0 }
 0x1e7   :  { %v196_v52 = vadd.f32 %v191_v51, %v115_v50 }
 0x1e9   :  { %v211_v53 = vsel %vm210_vm1, %v196_v52, 0.0 }
 0x1ea   :  { %213 = vadd.xlane.f32.xlu2 %v211_v53 }
 0x1ee   :  { %v193_v56 = vpop.f32.mrf.mxu0 }
 0x1ef   :  { %v197_v57 = vadd.f32 %v193_v56, %v116_v55 }
 0x1f1   :  { %v212_v58 = vsel %vm210_vm1, %v197_v57, 0.0 }
 0x1f2   :  { %215 = vadd.xlane.f32.xlu0 %v212_v58 }
 0x25d   :  { %v214_v59 = vpop.xlane.xlu2 %213 }
 0x25e   :  { %v217_v60 = vmax.f32 %v214_v59, 1e-30 }
 0x260   :  { %315 = vrcp.f32 %v217_v60 }
 0x265   :  { %v216_v61 = vpop.xlane.xlu0 %215 }
 0x266   :  { %v316_v62 = vpop.eup %315  ;;  %v218_v63 = vmax.f32 %v216_v61, 1e-30 }
 0x267   :  { %v221_v0 = vmul.f32 %v316_v62, %v217_v60 }
 0x268   :  { %317 = vrcp.f32 %v218_v63 }
 0x269   :  { %v223_v1 = vsub.f32 2.0, %v221_v0 }
 0x26b   :  { %v225_v2 = vmul.f32 %v316_v62, %v223_v1 }
 0x26d   :  { %v227_v3 = vmul.f32 %v225_v2, %v196_v52 }
 0x26e   :  { %v318_v4 = vpop.eup %317 }
 0x26f   :  { %229 = vst [vmem:[#allocation8] sm:$0xff] %v227_v3  ;;  %v222_v5 = vmul.f32 %v318_v4, %v218_v63 }
 0x271   :  { %v224_v6 = vsub.f32 2.0, %v222_v5 }
 0x273   :  { %v226_v7 = vmul.f32 %v318_v4, %v224_v6 }
 0x275   :  { %v228_v8 = vmul.f32 %v226_v7, %v197_v57 }
 0x277   :  { %230 = vst [vmem:[#allocation8 + $0x8] sm:$0xff] %v228_v8 }
 0x278   :  { %243 = dma.vmem_to_hbm [thread:$0]  %s236_s27, 256, %s238_s30, [#allocation7], %s377_s5, %s377_s5, %s378_s6  }
 0x279   :  { %369 = dma.done.wait [#allocation7], 256  }
 0x27a   :  { %370 = vsyncadd [#allocation7], 4294967040 }
 0x27b   :  { %248 = vsyncpa [#allocation6], 1 }
 0x27c   :  { %249 = vsyncpa [#allocation7], 1 }

</bundles_post_ra>
